<compile_context>
chip_gen: v7x
topology: tpu7x:2x2x1
jax: 0.10.0
libtpu: 0.0.40
codegen_flags: <defaults>
</compile_context>

<pallas_src>
import jax
import jax.numpy as jnp
from jax.experimental import pallas as pl
from jax.experimental.pallas import tpu as pltpu

ROW_ALIGN = 16   # row alignment for bf16 (16, 128) sublane packing


def _round_up(x, m):
    return ((x + m - 1) // m) * m


def mlp_predictor_kernel(x_ref, w_ref, b_ref, out_ref):
    """One edge tile of the MLPPredictor.

    x_ref   : (TILE_E, 2F) bf16  per-edge features: [h_src | h_dst]
    w_ref   : (2F, C)      bf16  Linear weight, y = x @ w + b
    b_ref   : (1, C)       f32   bias
    out_ref : (TILE_E, C)  f32   edge scores
    """
    out_ref[...] = (
        jnp.dot(x_ref[...], w_ref[...], preferred_element_type=jnp.float32)
        + b_ref[...]
    )


def mlp_predictor_forward(h, src, dst, w, b, *, tile_e=1024):
    """score[e] = cat([h[src[e]], h[dst[e]]]) @ w + b.

    h   : (N, F) f32 node embeddings
    src : (E,)   int32 edge source node ids
    dst : (E,)   int32 edge destination node ids
    w   : (2F, C) f32  Linear weight laid out so that y = x @ w + b
    b   : (C,)   f32
    returns (E, C) f32 edge scores.
    """
    n, f = h.shape
    e = src.shape[0]
    two_f, c = w.shape
    assert two_f == 2 * f

    if e == 0:                                      # degenerate graph: no edges
        return jnp.zeros((0, c), jnp.float32)

    # --- XLA glue: compact per-edge feature slab (no lane padding) -----------
    # (E, 2F) bf16 — only the useful bytes are streamed to/from HBM.
    xcat = jnp.concatenate([h[src], h[dst]], axis=1).astype(jnp.bfloat16)

    # --- tile selection -------------------------------------------------------
    # * multiple of 16 rows (bf16 packing)
    # * large enough to amortize per-step overhead (default 1024 rows)
    # * capped so the 1-D "parallel" grid has >=2 steps when possible, so both
    #   v7x TensorCores get work.
    tile_e = max(ROW_ALIGN, (tile_e // ROW_ALIGN) * ROW_ALIGN)
    e_aligned = _round_up(e, ROW_ALIGN)
    two_tiles = _round_up(pl.cdiv(e_aligned, 2), ROW_ALIGN)
    tile_e = min(tile_e, two_tiles)
    e_pad = _round_up(e_aligned, tile_e)

    xcat = jnp.pad(xcat, ((0, e_pad - e), (0, 0)))  # zero rows -> bias-only rows, sliced off

    w_bf = w.astype(jnp.bfloat16)                   # (2F, C) streamed once, stays resident
    b_f32 = b.astype(jnp.float32).reshape(1, c)

    # --- tiled, pipelined, megacore-parallel Pallas call ----------------------
    grid = (e_pad // tile_e,)
    out_pad = pl.pallas_call(
        mlp_predictor_kernel,
        out_shape=jax.ShapeDtypeStruct((e_pad, c), jnp.float32),
        grid=grid,
        in_specs=[
            pl.BlockSpec((tile_e, 2 * f), lambda i: (i, 0)),   # streaming edge tile
            pl.BlockSpec((2 * f, c), lambda i: (0, 0)),        # weight (resident, <1 KB)
            pl.BlockSpec((1, c), lambda i: (0, 0)),            # bias (resident)
        ],
        out_specs=pl.BlockSpec((tile_e, c), lambda i: (i, 0)),
        compiler_params=pltpu.CompilerParams(
            dimension_semantics=("parallel",),          # edge tiles are independent
            vmem_limit_bytes=32 * 1024 * 1024,          # explicit, safe on v5e/v6e/v7x
        ),
    )(xcat, w_bf, b_f32)

    return out_pad[:e]


if __name__ == "__main__":
    # Small shapes consistent with the E-GraphSAGE use of MLPPredictor:
    # node embeddings of width 20 (SIZE_EMBEDDING), binary edge classification.
    in_features = 20
    out_classes = 2
    N, E = 40, 200

    key = jax.random.PRNGKey(0)
    k_h, k_src, k_dst, k_w, k_b = jax.random.split(key, 5)

    h = jax.random.normal(k_h, (N, in_features), jnp.float32)
    src = jax.random.randint(k_src, (E,), 0, N, dtype=jnp.int32)
    dst = jax.random.randint(k_dst, (E,), 0, N, dtype=jnp.int32)
    # nn.Linear(2*in_features, out_classes): y = x @ W + b  (W stored as (2F, C))
    w = 0.1 * jax.random.normal(k_w, (2 * in_features, out_classes), jnp.float32)
    b = 0.1 * jax.random.normal(k_b, (out_classes,), jnp.float32)

    score = mlp_predictor_forward(h, src, dst, w, b)
    jax.block_until_ready(score)
    assert score.shape == (E, out_classes)

    # Reference through the same bf16 operand cast (kernel accumulates in f32).
    xc = jnp.concatenate([h[src], h[dst]], axis=1).astype(jnp.bfloat16).astype(jnp.float32)
    wf = w.astype(jnp.bfloat16).astype(jnp.float32)
    ref = xc @ wf + b
    assert jnp.allclose(score, ref, rtol=1e-3, atol=1e-3), float(jnp.max(jnp.abs(score - ref)))

    # Sanity vs. the pure-f32 module semantics (bf16 streaming error only).
    ref_f32 = jnp.concatenate([h[src], h[dst]], axis=1) @ w + b
    assert jnp.allclose(score, ref_f32, rtol=3e-2, atol=3e-2)

    print("KERNEL_OK")
</pallas_src>

<mosaic_0001>
module attributes {stable_mosaic.version = 11 : i64} {
  func.func @mlp_predictor_kernel(%arg0: i32, %arg1: memref<112x40xbf16, #tpu.memory_space<vmem>>, %arg2: memref<40x2xbf16, #tpu.memory_space<vmem>>, %arg3: memref<1x2xf32, #tpu.memory_space<vmem>>, %arg4: memref<112x2xf32, #tpu.memory_space<vmem>>) attributes {dimension_semantics = [#tpu.dimension_semantics<parallel>], iteration_bounds = array<i64: 2>, scalar_prefetch = 0 : i64, scratch_operands = 0 : i64, tpu.core_type = #tpu.core_type<tc>, window_params = [{transform_indices = @transform_0, window_bounds = array<i64: 112, 40>}, {pipeline_mode = #tpu.pipeline_mode<synchronous>, transform_indices = @transform_1, window_bounds = array<i64: 40, 2>}, {pipeline_mode = #tpu.pipeline_mode<synchronous>, transform_indices = @transform_2, window_bounds = array<i64: 1, 2>}, {transform_indices = @transform_3, window_bounds = array<i64: 112, 2>}]} {
    %c0 = arith.constant 0 : index
    %c0_0 = arith.constant 0 : index
    %0 = vector.load %arg1[%c0, %c0_0] : memref<112x40xbf16, #tpu.memory_space<vmem>>, vector<112x40xbf16>
    %c0_1 = arith.constant 0 : index
    %c0_2 = arith.constant 0 : index
    %1 = vector.load %arg2[%c0_1, %c0_2] : memref<40x2xbf16, #tpu.memory_space<vmem>>, vector<40x2xbf16>
    %cst = arith.constant dense<0.000000e+00> : vector<112x2xf32>
    %2 = tpu.matmul %0, %1, %cst {dimension_numbers = #tpu.dot_dimension_numbers<[1], [0], [0], [1], [0, 0, 1, 1], [], []>} : vector<112x40xbf16>, vector<40x2xbf16>, vector<112x2xf32> -> vector<112x2xf32>
    %c0_3 = arith.constant 0 : index
    %c0_4 = arith.constant 0 : index
    %3 = vector.load %arg3[%c0_3, %c0_4] : memref<1x2xf32, #tpu.memory_space<vmem>>, vector<1x2xf32>
    %4 = vector.broadcast %3 : vector<1x2xf32> to vector<112x2xf32>
    %5 = arith.addf %2, %4 : vector<112x2xf32>
    %c0_5 = arith.constant 0 : index
    %c0_6 = arith.constant 0 : index
    %6 = vector.load %arg4[%c0_5, %c0_6] : memref<112x2xf32, #tpu.memory_space<vmem>>, vector<112x2xf32>
    tpu.vector_store %arg4[%c0_5, %c0_6], %5 {strides = array<i32>} : memref<112x2xf32, #tpu.memory_space<vmem>>, vector<112x2xf32>,
    return
  }
  func.func @transform_0(%arg0: i32) -> (i32, i32) {
    %c0_i32 = arith.constant 0 : i32
    %c0_i32_0 = arith.constant 0 : i32
    return %arg0, %c0_i32 : i32, i32
  }
  func.func @transform_1(%arg0: i32) -> (i32, i32) {
    %c0_i32 = arith.constant 0 : i32
    %c0_i32_0 = arith.constant 0 : i32
    %c0_i32_1 = arith.constant 0 : i32
    return %c0_i32, %c0_i32_0 : i32, i32
  }
  func.func @transform_2(%arg0: i32) -> (i32, i32) {
    %c0_i32 = arith.constant 0 : i32
    %c0_i32_0 = arith.constant 0 : i32
    %c0_i32_1 = arith.constant 0 : i32
    return %c0_i32, %c0_i32_0 : i32, i32
  }
  func.func @transform_3(%arg0: i32) -> (i32, i32) {
    %c0_i32 = arith.constant 0 : i32
    %c0_i32_0 = arith.constant 0 : i32
    return %arg0, %c0_i32 : i32, i32
  }
}

</mosaic_0001>

<bundles_post_ra>
// kernel: tpu_custom_call.1
= control target key start
LH: loop header
LB: loop body
LE: loop exit
PB: predicated region body
PF: predicated region fallthrough
CT: control target
= control target key end

     0   :  { %s564_s12 = smov 0   ;;  %s641_s0 = inlined_call_operand.vmem [shape: bf16[224,40], index: 0, kind: input, shape index: {}]   ;;  %s642_s1 = inlined_call_operand.vmem [shape: bf16[40,2], index: 1, kind: input, shape index: {}]   ;;  %s643_s2 = inlined_call_operand.vmem [shape: f32[1,2], index: 2, kind: input, shape index: {}]   ;;  %s644_s3 = inlined_call_operand.vmem [shape: f32[224,2], index: 3, kind: output, shape index: {}]  }
   0x1 LB: > { %s437_s13 = sadd.s32 4294967295, %s540_s12   ;;  %p441_p0 = scmp.ge.s32.totalorder %s540_s12, 1  ;;  %s540_s12 = sphi %s564_s12, %s13_s12  }
   0x2   : > { %p138_p1 = scmp.lt.s32.totalorder %s540_s12, 3 }
   0x4   : > { %p139_p2 = pnand %p441_p0, %p138_p1 }
   0x5   : > { %v524_v0 = vld [vmem:[%s642_s1] sm:$0xff] (!%p139_p2)   ;;  %v542_v1 = vmov (!%p139_p2), 0.0   ;;  %v525_v2 = vld [vmem:[%s642_s1 + $0x8] sm:$0xff] (!%p139_p2)   ;;  %s162_s18 = smul.u32 (!%p139_p2), 14, %s437_s13  ;;  %v526_v3 = vld [vmem:[%s642_s1 + $0x10] ss:$0 sps:$4 sm:$0xff] (!%p139_p2)  }
   0x6   : > { %142 = sbr.rel (%p139_p2) target bundleno = 259 (0x103), region = 32  ;;  %474 = vmatprep.subr.bf16.mxu0 (!%p139_p2), %v542_v1  ;;  %508 = vmatprep.subr.bf16.mxu1 (!%p139_p2), %v542_v1  ;;  %vm273_vm0 = vcmask (!%p139_p2), 1043456   ;;  %vm543_vm1 = vmmov (!%p139_p2), 0   ;;  %vm251_vm2 = vcmask (!%p139_p2), 326656   ;;  %v444_v12 = vld [vmem:[%s643_s2] ss:$0 sm:$0xff] (!%p139_p2) }
   0x7   : > { %475 = vmatpush3.bf16.msra.mxu0 (!%p139_p2), %v524_v0  ;;  %511 = vmatpush3.bf16.msra.mxu1 (!%p139_p2), %v524_v0  ;;  %p163_p3 = scmp.lt.s32.totalorder (!%p139_p2), %s162_s18, 27  ;;  %v275_v4 = vsel (!%p139_p2), %vm273_vm0, %v526_v3, 0  ;;  %vm366_vm3 = vcmask (!%p139_p2), 15360  }
   0x8   : > { %476 = vmatprep.subr.bf16.mxu0 (!%p139_p2), %v542_v1  ;;  %509 = vmatprep.subr.bf16.mxu1 (!%p139_p2), %v542_v1 }
   0x9   : > { %480 = vmatprep.mubr.msk.bf16.mxu0 (!%p139_p2), %vm543_vm1, %v542_v1  ;;  %496 = vmatprep.mubr.msk.bf16.mxu1 (!%p139_p2), %vm543_vm1, %v542_v1 }
   0xb   : > { %477 = vmatpush3.bf16.msra.mxu0 (!%p139_p2), %v525_v2  ;;  %512 = vmatpush3.bf16.msra.mxu1 (!%p139_p2), %v525_v2 }
   0xc   : > { %478 = vmatprep.subr.bf16.mxu0 (!%p139_p2), %v542_v1  ;;  %510 = vmatprep.subr.bf16.mxu1 (!%p139_p2), %v542_v1 }
   0xd   : > { %s646_s18 = smov (!%p163_p3, %s162_s18), 27 }
   0xe   : > { %s442_s21 = sshll.u32 %s646_s18, 2  ;;  %s443_s25 = sshll.u32 %s646_s18, 3 }
   0xf   : > { %s166_s24 = scalar_lea.vmem %s641_s0, %s442_s21  ;;  %479 = vmatpush3.bf16.msra.mxu0 %v275_v4  ;;  %513 = vmatpush3.bf16.msra.mxu1 %v275_v4  ;;  %s608_s30 = scalar_lea.vmem %s644_s3, %s443_s25 }
  0x10   : > { %v527_v5 = vld [vmem:[%s166_s24] sm:$0xff]   ;;  %v529_v7 = vld [vmem:[%s166_s24 + $0x8] sm:$0xff]   ;;  %v531_v9 = vld [vmem:[%s166_s24 + $0x10] sm:$0xff]  }
  0x11   : > { %v528_v6 = vld [vmem:[%s166_s24 + $0x20] sm:$0xff]   ;;  %v530_v8 = vld [vmem:[%s166_s24 + $0x28] sm:$0xff]   ;;  %v532_v10 = vld [vmem:[%s166_s24 + $0x30] sm:$0xff]  }
  0x12   : > { %481 = vmatmul.mubr.msk.bf16.vlgmr.msra.gmra.mrb[0].mxu0 %vm251_vm2, %v527_v5  ;;  %497 = vmatmul.mubr.msk.bf16.vlgmr.msra.gmra.mrb[0].mxu1 %vm251_vm2, %v528_v6  ;;  %v533_v11 = vld [vmem:[%s166_s24 + $0x18] sm:$0xff]  }
  0x13   : > { %484 = vmatprep.mubr.msk.bf16.mxu0 %vm543_vm1, %v542_v1  ;;  %500 = vmatprep.mubr.msk.bf16.mxu1 %vm543_vm1, %v542_v1 }
  0x1a   : > { %485 = vmatmul.mubr.msk.bf16.gmra.mrb[4].mxu0 %vm251_vm2, %v529_v7  ;;  %501 = vmatmul.mubr.msk.bf16.gmra.mrb[4].mxu1 %vm251_vm2, %v530_v8 }
  0x1b   : > { %488 = vmatprep.mubr.msk.bf16.mxu0 %vm543_vm1, %v542_v1  ;;  %504 = vmatprep.mubr.msk.bf16.mxu1 %vm543_vm1, %v542_v1 }
  0x22   : > { %489 = vmatmul.mubr.msk.bf16.gmra.mrb[8].mxu0 %vm251_vm2, %v531_v9  ;;  %505 = vmatmul.mubr.msk.bf16.gmra.mrb[8].mxu1 %vm251_vm2, %v532_v10 }
  0x23   : > { %492 = vmatprep.mubr.msk.bf16.mxu0 %vm543_vm1, %v542_v1 }
  0x2a   : > { %493 = vmatmul.mubr.msk.bf16.gmra.mrb[12].mxu0 %vm251_vm2, %v533_v11 }
  0xe5   : > { %v311_v13 = vpop.f32.mrb[0].mxu0  ;;  %v343_v14 = vpop.f32.mrb[0].mxu1 }
  0xe6   : > { %v312_v15 = vadd.f32 %v444_v12, %v311_v13  ;;  %v482_v16 = vpop.f32.mrb[1].mxu0  ;;  %v344_v17 = vadd.f32 %v444_v12, %v343_v14  ;;  %v498_v18 = vpop.f32.mrb[1].mxu1 }
  0xe7   : > { %v314_v19 = vpop.f32.mrb[2].mxu0  ;;  %v346_v20 = vpop.f32.mrb[2].mxu1 }
  0xe8   : > { %367 = vst.msk [vmem:[%s608_s30] sm:$0xff] %vm366_vm3, %v312_v15  ;;  %v315_v21 = vadd.f32 %v444_v12, %v314_v19  ;;  %v483_v22 = vpop.f32.mrb[3].mxu0  ;;  %375 = vst.msk [vmem:[%s608_s30 + $0x40] sm:$0xff] %vm366_vm3, %v344_v17  ;;  %v347_v23 = vadd.f32 %v444_v12, %v346_v20  ;;  %v499_v24 = vpop.f32.mrb[3].mxu1 }
  0xea   : > { %368 = vst.msk [vmem:[%s608_s30 + $0x8] sm:$0xff] %vm366_vm3, %v315_v21  ;;  %376 = vst.msk [vmem:[%s608_s30 + $0x48] sm:$0xff] %vm366_vm3, %v347_v23 }
  0xed   : > { %v319_v25 = vpop.f32.mrb[4].mxu0  ;;  %v351_v26 = vpop.f32.mrb[4].mxu1 }
  0xee   : > { %v320_v27 = vadd.f32 %v444_v12, %v319_v25  ;;  %v486_v28 = vpop.f32.mrb[5].mxu0  ;;  %v352_v29 = vadd.f32 %v444_v12, %v351_v26  ;;  %v502_v30 = vpop.f32.mrb[5].mxu1 }
  0xef   : > { %v322_v31 = vpop.f32.mrb[6].mxu0  ;;  %v354_v32 = vpop.f32.mrb[6].mxu1 }
  0xf0   : > { %369 = vst.msk [vmem:[%s608_s30 + $0x10] sm:$0xff] %vm366_vm3, %v320_v27  ;;  %v323_v33 = vadd.f32 %v444_v12, %v322_v31  ;;  %v487_v34 = vpop.f32.mrb[7].mxu0  ;;  %377 = vst.msk [vmem:[%s608_s30 + $0x50] sm:$0xff] %vm366_vm3, %v352_v29  ;;  %v355_v35 = vadd.f32 %v444_v12, %v354_v32  ;;  %v503_v36 = vpop.f32.mrb[7].mxu1 }
  0xf2   : > { %370 = vst.msk [vmem:[%s608_s30 + $0x18] sm:$0xff] %vm366_vm3, %v323_v33  ;;  %378 = vst.msk [vmem:[%s608_s30 + $0x58] sm:$0xff] %vm366_vm3, %v355_v35 }
  0xf5   : > { %v327_v37 = vpop.f32.mrb[8].mxu0  ;;  %v359_v38 = vpop.f32.mrb[8].mxu1 }
  0xf6   : > { %v328_v39 = vadd.f32 %v444_v12, %v327_v37  ;;  %v490_v40 = vpop.f32.mrb[9].mxu0  ;;  %v360_v41 = vadd.f32 %v444_v12, %v359_v38  ;;  %v506_v42 = vpop.f32.mrb[9].mxu1 }
  0xf7   : > { %v330_v43 = vpop.f32.mrb[10].mxu0  ;;  %v362_v44 = vpop.f32.mrb[10].mxu1 }
  0xf8   : > { %371 = vst.msk [vmem:[%s608_s30 + $0x20] sm:$0xff] %vm366_vm3, %v328_v39  ;;  %v331_v45 = vadd.f32 %v444_v12, %v330_v43  ;;  %v491_v46 = vpop.f32.mrb[11].mxu0  ;;  %379 = vst.msk [vmem:[%s608_s30 + $0x60] sm:$0xff] %vm366_vm3, %v360_v41  ;;  %v363_v47 = vadd.f32 %v444_v12, %v362_v44  ;;  %v507_v48 = vpop.f32.mrb[11].mxu1 }
  0xfa   : > { %372 = vst.msk [vmem:[%s608_s30 + $0x28] sm:$0xff] %vm366_vm3, %v331_v45  ;;  %380 = vst.msk [vmem:[%s608_s30 + $0x68] sm:$0xff] %vm366_vm3, %v363_v47 }
  0xfd   : > { %v335_v49 = vpop.f32.mrb[12].mxu0 }
  0xfe   : > { %v336_v50 = vadd.f32 %v444_v12, %v335_v49  ;;  %v494_v51 = vpop.f32.mrb[13].mxu0 }
  0xff   : > { %v338_v52 = vpop.f32.mrb[14].mxu0 }
 0x100   : > { %373 = vst.msk [vmem:[%s608_s30 + $0x30] sm:$0xff] %vm366_vm3, %v336_v50  ;;  %v339_v53 = vadd.f32 %v444_v12, %v338_v52  ;;  %v495_v54 = vpop.f32.mrb[15].mxu0 }
 0x102   : > { %374 = vst.msk [vmem:[%s608_s30 + $0x38] sm:$0xff] %vm366_vm3, %v339_v53 }
 0x103 PF: > { %s13_s12 = sadd.s32 1, %s540_s12  }
 0x104   : > { %p10_p4 = scmp.ge.s32.totalorder %s13_s12, 4  }
 0x106   :  { %12 = sbr.rel (!%p10_p4) target bundleno = 1 (0x1), region = 62 }

</bundles_post_ra>
